<compile_context>
chip_gen: v6e
topology: v6e:2x2x1
jax: 0.10.0
libtpu: 0.0.40
codegen_flags: <defaults>
</compile_context>

<pallas_src>
import functools
import math

import jax
import jax.numpy as jnp
from jax.experimental import pallas as pl
from jax.experimental.pallas import tpu as pltpu


VMEM_LIMIT = 32 * 1024 * 1024  # <= default scoped VMEM on v6e/v7x, raises v5e's 16 MiB


# ----------------------------- tiling helper ------------------------------

def _tile(dim, pref, align):
    """Largest power-of-two tile <= pref, >= align, dividing dim; else full dim."""
    t = pref
    while t >= align:
        if dim % t == 0:
            return t
        t //= 2
    return dim


# ----------------------------- Pallas kernels ------------------------------

def linear_kernel(x_ref, w_ref, b_ref, o_ref, acc_ref, *, activation):
    """Tiled out = act(x @ w + b). x:(tm,tk) bf16, w:(tk,tn) bf16, b:(1,tn) f32,
    acc:(tm,tn) f32 scratch. Grid = (M/tm, N/tn, K/tk), K axis last."""
    @pl.when(pl.program_id(2) == 0)
    def _():
        acc_ref[...] = jnp.zeros_like(acc_ref)

    acc_ref[...] += jnp.dot(x_ref[...], w_ref[...],
                            preferred_element_type=jnp.float32)

    @pl.when(pl.program_id(2) == pl.num_programs(2) - 1)
    def _():
        y = acc_ref[...] + b_ref[...]          # f32 epilogue (v5e-safe: no bf16 VPU/EUP)
        if activation == "gelu":
            # TODO(synk): HF BERT default is erf-based GELU; tanh approximation
            # used since erf lowering is not guaranteed on Mosaic.
            y = 0.5 * y * (1.0 + jnp.tanh(
                math.sqrt(2.0 / math.pi) * (y + 0.044715 * y * y * y)))
        elif activation == "tanh":
            y = jnp.tanh(y)
        o_ref[...] = y.astype(o_ref.dtype)


def linear_add_ln_kernel(x_ref, w_ref, b_ref, r_ref, g_ref, be_ref, o_ref,
                         acc_ref, *, eps):
    """Fused out = LayerNorm((x @ w + b) + residual).  tn == full N so the
    epilogue sees whole rows.  Grid = (M/tm, K/tk), K last. Stats in f32."""
    @pl.when(pl.program_id(1) == 0)
    def _():
        acc_ref[...] = jnp.zeros_like(acc_ref)

    acc_ref[...] += jnp.dot(x_ref[...], w_ref[...],
                            preferred_element_type=jnp.float32)

    @pl.when(pl.program_id(1) == pl.num_programs(1) - 1)
    def _():
        y = acc_ref[...] + b_ref[...] + r_ref[...].astype(jnp.float32)
        mu = jnp.mean(y, axis=-1, keepdims=True)
        yc = y - mu
        var = jnp.mean(yc * yc, axis=-1, keepdims=True)
        o_ref[...] = (yc * jax.lax.rsqrt(var + eps) * g_ref[...]
                      + be_ref[...]).astype(o_ref.dtype)


def layernorm_kernel(x_ref, g_ref, b_ref, o_ref, *, eps):
    """Row-tiled LayerNorm over last axis (used for the embedding LN)."""
    x = x_ref[...].astype(jnp.float32)
    mu = jnp.mean(x, axis=-1, keepdims=True)
    xc = x - mu
    var = jnp.mean(xc * xc, axis=-1, keepdims=True)
    o_ref[...] = (xc * jax.lax.rsqrt(var + eps) * g_ref[...]
                  + b_ref[...]).astype(o_ref.dtype)


def attn_kernel(mask_ref, qkv_ref, o_ref, *, num_heads, head_dim, scale):
    """One batch element per grid step.  qkv block: (1, L, 3H) bf16 straight
    from the fused QKV matmul (no host-side split/transpose); heads are sliced
    in-kernel (static lane slices) so only one (L, L) f32 score tile is live at
    a time.  Output is written heads-merged, lane-dense, as (1, L, H) bf16."""
    H = num_heads * head_dim
    neg = (1.0 - mask_ref[0]) * -1e9                 # (1, L) additive bias, in-kernel
    outs = []
    # TODO(synk): for very long sequences (L >= 1024) add flash-style KV tiling
    # with online softmax; at L<=512 the per-head (L, L) score already fits VMEM.
    for h in range(num_heads):
        q = qkv_ref[0, :, h * head_dim:(h + 1) * head_dim]            # (L, dh) bf16
        k = qkv_ref[0, :, H + h * head_dim:H + (h + 1) * head_dim]
        v = qkv_ref[0, :, 2 * H + h * head_dim:2 * H + (h + 1) * head_dim]
        s = jax.lax.dot_general(q, k, (((1,), (1,)), ((), ())),
                                preferred_element_type=jnp.float32) * scale  # (L, L)
        s = s + neg                                                     # broadcast rows
        m = jnp.max(s, axis=-1, keepdims=True)
        p = jnp.exp(s - m)
        denom = jnp.sum(p, axis=-1, keepdims=True)
        p = p * pl.reciprocal(denom, approx=True)                       # EUP divide
        ctx = jnp.dot(p.astype(v.dtype), v,
                      preferred_element_type=jnp.float32)               # (L, dh)
        outs.append(ctx.astype(o_ref.dtype))
    o_ref[0] = jnp.concatenate(outs, axis=-1)                           # (L, H) dense


# ----------------------------- Pallas wrappers ------------------------------

def pallas_linear(x, w, b, activation="none", out_dtype=jnp.bfloat16):
    M, K = x.shape
    N = w.shape[1]
    x = x.astype(jnp.bfloat16)
    w = w.astype(jnp.bfloat16)
    tm = _tile(M, 256, 16)          # bf16 packs (16,128) per vreg
    tn = _tile(N, 512, 128)
    tk = _tile(K, 512, 128)
    grid = (M // tm, N // tn, K // tk)
    return pl.pallas_call(
        functools.partial(linear_kernel, activation=activation),
        out_shape=jax.ShapeDtypeStruct((M, N), out_dtype),
        grid=grid,
        in_specs=[
            pl.BlockSpec((tm, tk), lambda i, j, k: (i, k)),
            pl.BlockSpec((tk, tn), lambda i, j, k: (k, j)),
            pl.BlockSpec((1, tn), lambda i, j, k: (0, j)),
        ],
        out_specs=pl.BlockSpec((tm, tn), lambda i, j, k: (i, j)),
        scratch_shapes=[pltpu.VMEM((tm, tn), jnp.float32)],
        compiler_params=pltpu.CompilerParams(
            dimension_semantics=("parallel", "parallel", "arbitrary"),
            vmem_limit_bytes=VMEM_LIMIT),
    )(x, w, b)


def pallas_linear_add_ln(x, w, b, residual, gamma, beta, eps,
                         out_dtype=jnp.bfloat16):
    """out = LayerNorm(x @ w + b + residual).  Full N per tile (tn = N)."""
    M, K = x.shape
    N = w.shape[1]
    x = x.astype(jnp.bfloat16)
    w = w.astype(jnp.bfloat16)
    residual = residual.astype(jnp.bfloat16)
    tm = _tile(M, 256, 16)
    tk = _tile(K, 512, 128)
    grid = (M // tm, K // tk)
    return pl.pallas_call(
        functools.partial(linear_add_ln_kernel, eps=eps),
        out_shape=jax.ShapeDtypeStruct((M, N), out_dtype),
        grid=grid,
        in_specs=[
            pl.BlockSpec((tm, tk), lambda i, k: (i, k)),
            pl.BlockSpec((tk, N), lambda i, k: (k, 0)),
            pl.BlockSpec((1, N), lambda i, k: (0, 0)),
            pl.BlockSpec((tm, N), lambda i, k: (i, 0)),   # residual (no re-DMA across k)
            pl.BlockSpec((1, N), lambda i, k: (0, 0)),
            pl.BlockSpec((1, N), lambda i, k: (0, 0)),
        ],
        out_specs=pl.BlockSpec((tm, N), lambda i, k: (i, 0)),
        scratch_shapes=[pltpu.VMEM((tm, N), jnp.float32)],
        compiler_params=pltpu.CompilerParams(
            dimension_semantics=("parallel", "arbitrary"),
            vmem_limit_bytes=VMEM_LIMIT),
    )(x, w, b, residual, gamma, beta)


def pallas_layernorm(x, g, b, eps, out_dtype=jnp.bfloat16):
    """LayerNorm(x), row-tiled over the grid (embedding LN)."""
    M, H = x.shape
    tm = _tile(M, 512, 8)
    grid = (M // tm,)
    row_spec = pl.BlockSpec((tm, H), lambda i: (i, 0))
    vec_spec = pl.BlockSpec((1, H), lambda i: (0, 0))
    return pl.pallas_call(
        functools.partial(layernorm_kernel, eps=eps),
        out_shape=jax.ShapeDtypeStruct((M, H), out_dtype),
        grid=grid,
        in_specs=[row_spec, vec_spec, vec_spec],
        out_specs=row_spec,
        compiler_params=pltpu.CompilerParams(
            dimension_semantics=("parallel",),
            vmem_limit_bytes=VMEM_LIMIT),
    )(x, g, b)


def pallas_attention(qkv, mask, num_heads, head_dim):
    """qkv: (B, L, 3H) bf16 straight from the fused QKV matmul.
    mask: (B, 1, L) f32.  Returns heads-merged context (B, L, H) bf16."""
    B, L, threeH = qkv.shape
    H = num_heads * head_dim
    scale = 1.0 / math.sqrt(head_dim)
    return pl.pallas_call(
        functools.partial(attn_kernel, num_heads=num_heads,
                          head_dim=head_dim, scale=scale),
        out_shape=jax.ShapeDtypeStruct((B, L, H), jnp.bfloat16),
        grid=(B,),
        in_specs=[
            pl.BlockSpec((1, 1, L), lambda b: (b, 0, 0)),
            pl.BlockSpec((1, L, threeH), lambda b: (b, 0, 0)),
        ],
        out_specs=pl.BlockSpec((1, L, H), lambda b: (b, 0, 0)),
        compiler_params=pltpu.CompilerParams(
            dimension_semantics=("parallel",),
            vmem_limit_bytes=VMEM_LIMIT),
    )(mask, qkv)


# ----------------------------- Parameters ------------------------------

def init_params(key, cfg):
    H, I, V, P = cfg["hidden"], cfg["inter"], cfg["vocab"], cfg["max_pos"]

    def nrm(k, shape, std=0.02, dtype=jnp.bfloat16):
        return (std * jax.random.normal(k, shape)).astype(dtype)

    keys = iter(jax.random.split(key, 8 + 8 * cfg["layers"]))
    params = {
        "word_emb": nrm(next(keys), (V, H), dtype=jnp.float32),
        "pos_emb": nrm(next(keys), (P, H), dtype=jnp.float32),
        "type_emb": nrm(next(keys), (2, H), dtype=jnp.float32),
        "emb_ln_g": jnp.ones((1, H), jnp.float32),
        "emb_ln_b": jnp.zeros((1, H), jnp.float32),
        "pool_w": nrm(next(keys), (H, H)),                      # bf16 matmul weight
        "pool_b": jnp.zeros((1, H), jnp.float32),
        "layers": [],
    }
    for _ in range(cfg["layers"]):
        lp = {
            # fused QKV projection: one (H, 3H) matmul instead of three (H, H)
            "qkv_w": nrm(next(keys), (H, 3 * H)),
            "qkv_b": jnp.zeros((1, 3 * H), jnp.float32),
            "ao_w": nrm(next(keys), (H, H)), "ao_b": jnp.zeros((1, H), jnp.float32),
            "attn_ln_g": jnp.ones((1, H), jnp.float32),
            "attn_ln_b": jnp.zeros((1, H), jnp.float32),
            "i_w": nrm(next(keys), (H, I)), "i_b": jnp.zeros((1, I), jnp.float32),
            "o_w": nrm(next(keys), (I, H)), "o_b": jnp.zeros((1, H), jnp.float32),
            "out_ln_g": jnp.ones((1, H), jnp.float32),
            "out_ln_b": jnp.zeros((1, H), jnp.float32),
        }
        params["layers"].append(lp)
    return params


# ----------------------------- Forward pass ------------------------------

def bert_encoder_forward(params, token, att_mask, pos1, pos2, cfg):
    """Mirrors BERTEncoder.forward: returns the BERT pooler output (B, H).
    pos1/pos2 are unused, as in the reference module."""
    del pos1, pos2
    B, L = token.shape
    H = cfg["hidden"]
    nH = cfg["heads"]
    dh = H // nH
    eps = cfg["eps"]

    # --- embeddings (gather is glue; layernorm is a Pallas kernel) ---
    x = (params["word_emb"][token]
         + params["pos_emb"][:L][None, :, :]
         + params["type_emb"][0][None, None, :]).astype(jnp.float32)   # (B, L, H)
    # TODO(synk): residual stream carried in bf16 (inference-grade precision).
    x = pallas_layernorm(x.reshape(B * L, H), params["emb_ln_g"],
                         params["emb_ln_b"], eps=eps)                  # (B*L, H) bf16

    # (B, 1, L) float mask; additive bias is built inside attn_kernel.
    mask = att_mask.astype(jnp.float32).reshape(B, 1, L)

    # --- transformer layers ---
    for lp in params["layers"]:
        qkv = pallas_linear(x, lp["qkv_w"], lp["qkv_b"])               # (B*L, 3H) bf16
        # attention consumes the fused QKV buffer directly (free reshape),
        # emits heads-merged lane-dense context.
        ctx = pallas_attention(qkv.reshape(B, L, 3 * H), mask, nH, dh) # (B, L, H) bf16
        # attention output projection with fused residual-add + LayerNorm
        x = pallas_linear_add_ln(ctx.reshape(B * L, H), lp["ao_w"], lp["ao_b"],
                                 residual=x, gamma=lp["attn_ln_g"],
                                 beta=lp["attn_ln_b"], eps=eps)        # bf16
        inter = pallas_linear(x, lp["i_w"], lp["i_b"], activation="gelu")  # bf16
        # FFN output projection with fused residual-add + LayerNorm
        x = pallas_linear_add_ln(inter, lp["o_w"], lp["o_b"],
                                 residual=x, gamma=lp["out_ln_g"],
                                 beta=lp["out_ln_b"], eps=eps)         # bf16

    # --- pooler: tanh(W @ h_cls + b) ---
    cls = x.reshape(B, L, H)[:, 0, :]                                  # (B, H)
    pooled = pallas_linear(cls, params["pool_w"], params["pool_b"],
                           activation="tanh", out_dtype=jnp.float32)
    return pooled                                                      # (B, H) f32


# ----------------------------- Main ------------------------------

if __name__ == "__main__":
    cfg = dict(vocab=64, max_pos=16, hidden=32, heads=4, inter=64, layers=2, eps=1e-12)
    B, L = 2, 8

    key = jax.random.PRNGKey(0)
    k_tok, k_param = jax.random.split(key)

    token = jax.random.randint(k_tok, (B, L), 0, cfg["vocab"], dtype=jnp.int32)
    lengths = jnp.array([L, L - 2], dtype=jnp.int32)
    att_mask = (jnp.arange(L)[None, :] < lengths[:, None]).astype(jnp.int32)   # (B, L)
    pos1 = jnp.array([[1], [2]], dtype=jnp.int32)
    pos2 = jnp.array([[3], [5]], dtype=jnp.int32)

    params = init_params(k_param, cfg)

    out = bert_encoder_forward(params, token, att_mask, pos1, pos2, cfg)
    out = jax.block_until_ready(out)

    assert out.shape == (B, cfg["hidden"]), out.shape
    assert jnp.all(jnp.isfinite(out))
    print("KERNEL_OK")
</pallas_src>

<mosaic_0001>
module attributes {stable_mosaic.version = 11 : i64} {
  func.func @layernorm_kernel(%arg0: i32, %arg1: memref<16x32xf32, #tpu.memory_space<vmem>>, %arg2: memref<1x32xf32, #tpu.memory_space<vmem>>, %arg3: memref<1x32xf32, #tpu.memory_space<vmem>>, %arg4: memref<16x32xbf16, #tpu.memory_space<vmem>>) attributes {dimension_semantics = [#tpu.dimension_semantics<parallel>], iteration_bounds = array<i64: 1>, scalar_prefetch = 0 : i64, scratch_operands = 0 : i64, tpu.core_type = #tpu.core_type<tc>, window_params = [{transform_indices = @transform_0, window_bounds = array<i64: 16, 32>}, {pipeline_mode = #tpu.pipeline_mode<synchronous>, transform_indices = @transform_1, window_bounds = array<i64: 1, 32>}, {pipeline_mode = #tpu.pipeline_mode<synchronous>, transform_indices = @transform_2, window_bounds = array<i64: 1, 32>}, {transform_indices = @transform_3, window_bounds = array<i64: 16, 32>}]} {
    %c0 = arith.constant 0 : index
    %c0_0 = arith.constant 0 : index
    %0 = vector.load %arg1[%c0, %c0_0] : memref<16x32xf32, #tpu.memory_space<vmem>>, vector<16x32xf32>
    %cst = arith.constant dense<0.000000e+00> : vector<16xf32>
    %1 = vector.multi_reduction <add>, %0, %cst [1] : vector<16x32xf32> to vector<16xf32>
    %2 = vector.shape_cast %1 : vector<16xf32> to vector<16x1xf32>
    %cst_1 = arith.constant 3.200000e+01 : f32
    %3 = vector.broadcast %cst_1 : f32 to vector<16x1xf32>
    %4 = arith.divf %2, %3 : vector<16x1xf32>
    %5 = vector.broadcast %4 : vector<16x1xf32> to vector<16x32xf32>
    %6 = arith.subf %0, %5 : vector<16x32xf32>
    %7 = arith.mulf %6, %6 : vector<16x32xf32>
    %cst_2 = arith.constant dense<0.000000e+00> : vector<16xf32>
    %8 = vector.multi_reduction <add>, %7, %cst_2 [1] : vector<16x32xf32> to vector<16xf32>
    %9 = vector.shape_cast %8 : vector<16xf32> to vector<16x1xf32>
    %cst_3 = arith.constant 3.200000e+01 : f32
    %10 = vector.broadcast %cst_3 : f32 to vector<16x1xf32>
    %11 = arith.divf %9, %10 : vector<16x1xf32>
    %cst_4 = arith.constant 9.99999996E-13 : f32
    %12 = vector.broadcast %cst_4 : f32 to vector<16x1xf32>
    %13 = arith.addf %11, %12 : vector<16x1xf32>
    %14 = math.rsqrt %13 : vector<16x1xf32>
    %15 = vector.broadcast %14 : vector<16x1xf32> to vector<16x32xf32>
    %16 = arith.mulf %6, %15 : vector<16x32xf32>
    %c0_5 = arith.constant 0 : index
    %c0_6 = arith.constant 0 : index
    %17 = vector.load %arg2[%c0_5, %c0_6] : memref<1x32xf32, #tpu.memory_space<vmem>>, vector<1x32xf32>
    %18 = vector.broadcast %17 : vector<1x32xf32> to vector<16x32xf32>
    %19 = arith.mulf %16, %18 : vector<16x32xf32>
    %c0_7 = arith.constant 0 : index
    %c0_8 = arith.constant 0 : index
    %20 = vector.load %arg3[%c0_7, %c0_8] : memref<1x32xf32, #tpu.memory_space<vmem>>, vector<1x32xf32>
    %21 = vector.broadcast %20 : vector<1x32xf32> to vector<16x32xf32>
    %22 = arith.addf %19, %21 : vector<16x32xf32>
    %23 = arith.truncf %22 : vector<16x32xf32> to vector<16x32xbf16>
    %c0_9 = arith.constant 0 : index
    %c0_10 = arith.constant 0 : index
    %24 = vector.load %arg4[%c0_9, %c0_10] : memref<16x32xbf16, #tpu.memory_space<vmem>>, vector<16x32xbf16>
    tpu.vector_store %arg4[%c0_9, %c0_10], %23 {strides = array<i32>} : memref<16x32xbf16, #tpu.memory_space<vmem>>, vector<16x32xbf16>,
    return
  }
  func.func @transform_0(%arg0: i32) -> (i32, i32) {
    %c0_i32 = arith.constant 0 : i32
    %c0_i32_0 = arith.constant 0 : i32
    return %arg0, %c0_i32 : i32, i32
  }
  func.func @transform_1(%arg0: i32) -> (i32, i32) {
    %c0_i32 = arith.constant 0 : i32
    %c0_i32_0 = arith.constant 0 : i32
    %c0_i32_1 = arith.constant 0 : i32
    return %c0_i32, %c0_i32_0 : i32, i32
  }
  func.func @transform_2(%arg0: i32) -> (i32, i32) {
    %c0_i32 = arith.constant 0 : i32
    %c0_i32_0 = arith.constant 0 : i32
    %c0_i32_1 = arith.constant 0 : i32
    return %c0_i32, %c0_i32_0 : i32, i32
  }
  func.func @transform_3(%arg0: i32) -> (i32, i32) {
    %c0_i32 = arith.constant 0 : i32
    %c0_i32_0 = arith.constant 0 : i32
    return %arg0, %c0_i32 : i32, i32
  }
}

</mosaic_0001>

<bundles_post_ra>
// kernel: tpu_custom_call.1
= control target key start
LH: loop header
LB: loop body
LE: loop exit
PB: predicated region body
PF: predicated region fallthrough
CT: control target
= control target key end

     0   :  { %8 = vsyncpa [#allocation3], 0  ;;  %s207_s0 = inlined_call_operand.hbm [shape: f32[16,32], index: 0, kind: input, shape index: {}]   ;;  %s208_s1 = inlined_call_operand.vmem [shape: f32[1,32], index: 1, kind: input, shape index: {}]   ;;  %s209_s2 = inlined_call_operand.vmem [shape: f32[1,32], index: 2, kind: input, shape index: {}]   ;;  %s210_s3 = inlined_call_operand.hbm [shape: bf16[16,32], index: 3, kind: output, shape index: {}]  }
   0x1   :  { %9 = vsyncpa [#allocation4], 0  ;;  %s165_s12 = smov [#allocation2]  }
   0x2   :  { %s15_s13 = sshll.u32 %s165_s12, 4  ;;  %s16_s13 = int_to_ptr.vmem [resolvable:$true] %s15_s13 }
   0x3   :  { %s129_s14 = scalar_lea.vmem %s16_s13, 256  ;;  %p134_p1 = scmp.lt.s32.totalorder %s16_s13, %s16_s13 }
   0x4   :  { %p130_p0 = scmp.ne.s32.totalorder %s16_s13, %s129_s14  ;;  %p135_p2 = scmp.lt.s32.totalorder %s129_s14, %s129_s14 }
   0x6   :  { %p136_p3 = por %p135_p2, %p134_p1 }
   0x8   :  { %p137_p4 = pnand %p136_p3, %p130_p0 }
   0xa   :  { %140 = shalt.err (!%p137_p4)
}
   0xb   :  { %s166_s15 = smov 128   ;;  %s167_s16 = smov 8  }
   0xc   :  { %21 = dma.hbm_to_vmem [thread:$0]  %s207_s0, 256, %s16_s13, [#allocation3], %s166_s15, %s166_s15, %s167_s16  }
   0xd   :  { %161 = dma.done.wait [#allocation3], 256  }
   0xe   :  { %162 = vsyncadd [#allocation3], 4294967040  ;;  %vm31_vm0 = vcmask 261120   ;;  %v29_v0 = vld [vmem:[#allocation2] sm:$0xff]  ;;  %v30_v1 = vld [vmem:[#allocation2 + $0x8] sm:$0xff]  ;;  %vm85_vm1 = vcmask 257024  }
   0xf   :  { %v32_v2 = vsel %vm31_vm0, %v29_v0, 0.0  ;;  %v35_v3 = vsel %vm31_vm0, %v30_v1, 0.0  ;;  %v105_v21 = vld [vmem:[%s208_s1] ss:$0 sm:$0xff]  ;;  %s168_s22 = smov [#allocation5]  }
  0x10   :  { %33 = vadd.xlane.f32.xlu0 %v32_v2  ;;  %v106_v23 = vld [vmem:[%s209_s2] ss:$0 sm:$0xff]  ;;  %s93_s23 = sshll.u32 %s168_s22, 4  ;;  %s94_s23 = int_to_ptr.vmem [resolvable:$true] %s93_s23 }
  0x11   :  { %s141_s1 = scalar_lea.vmem %s94_s23, 128  ;;  %p146_p6 = scmp.lt.s32.totalorder %s94_s23, %s94_s23 }
  0x12   :  { %p142_p5 = scmp.ne.s32.totalorder %s94_s23, %s141_s1  ;;  %p147_p7 = scmp.lt.s32.totalorder %s141_s1, %s141_s1 }
  0x14   :  { %36 = vadd.xlane.f32.xlu0 %v35_v3  ;;  %p148_p8 = por %p147_p7, %p146_p6 }
  0x16   :  { %p149_p9 = pnand %p148_p8, %p142_p5 }
  0x99   :  { %v34_v4 = vpop.xlane.xlu0 %33 }
  0x9a   :  { %v39_v5 = vmul.f32 0.03125, %v34_v4 }
  0x9c   :  { %v41_v6 = vsub.f32 %v29_v0, %v39_v5 }
  0x9d   :  { %v37_v7 = vpop.xlane.xlu0 %36 }
  0x9e   :  { %v40_v8 = vmul.f32 0.03125, %v37_v7  ;;  %v43_v9 = vmul.f32 %v41_v6, %v41_v6 }
  0xa0   :  { %v42_v10 = vsub.f32 %v30_v1, %v40_v8  ;;  %v45_v11 = vsel %vm31_vm0, %v43_v9, 0.0 }
  0xa1   :  { %46 = vadd.xlane.f32.xlu1 %v45_v11 }
  0xa2   :  { %v44_v12 = vmul.f32 %v42_v10, %v42_v10 }
  0xa4   :  { %v48_v13 = vsel %vm31_vm0, %v44_v12, 0.0 }
  0xa5   :  { %49 = vadd.xlane.f32.xlu1 %v48_v13 }
 0x12a   :  { %v47_v14 = vpop.xlane.xlu1 %46 }
 0x12b   :  { %v51_v15 = vmul.f32 0.03125, %v47_v14 }
 0x12d   :  { %v53_v16 = vadd.f32 1e-12, %v51_v15 }
 0x12e   :  { %v50_v17 = vpop.xlane.xlu1 %49 }
 0x12f   :  { %117 = vrsqrt.f32 %v53_v16  ;;  %v52_v18 = vmul.f32 0.03125, %v50_v17 }
 0x131   :  { %v54_v19 = vadd.f32 1e-12, %v52_v18 }
 0x133   :  { %119 = vrsqrt.f32 %v54_v19 }
 0x13c   :  { %v118_v20 = vpop.eup %117 }
 0x13d   :  { %v57_v22 = vmul.f32 %v118_v20, %v41_v6 }
 0x13f   :  { %v66_v24 = vmul.f32 %v105_v21, %v57_v22 }
 0x140   :  { %v120_v25 = vpop.eup %119 }
 0x141   :  { %v58_v26 = vmul.f32 %v120_v25, %v42_v10  ;;  %v75_v27 = vadd.f32 %v106_v23, %v66_v24 }
 0x143   :  { %v67_v28 = vmul.f32 %v105_v21, %v58_v26  ;;  %v109_v29 = vpack.c.bf16 %v75_v27, %v75_v27 }
 0x145   :  { %v76_v30 = vadd.f32 %v106_v23, %v67_v28  ;;  %86 = vst.msk [vmem:[#allocation5] sm:$0xf] %vm85_vm1, %v109_v29 }
 0x147   :  { %v110_v31 = vpack.c.bf16 %v76_v30, %v76_v30 }
 0x149   :  { %87 = vst.msk [vmem:[#allocation5 + $0x4] sm:$0xf] %vm85_vm1, %v110_v31 }
 0x14a   :  { %152 = shalt.err (!%p149_p9)
}
 0x14b   :  { %s169_s2 = smov 64   ;;  %s170_s24 = smov 4  }
 0x14c   :  { %99 = dma.vmem_to_hbm [thread:$0]  %s94_s23, 128, %s210_s3, [#allocation4], %s169_s2, %s169_s2, %s170_s24  }
 0x14d   :  { %163 = dma.done.wait [#allocation4], 128  }
 0x14e   :  { %164 = vsyncadd [#allocation4], 4294967168 }
 0x14f   :  { %103 = vsyncpa [#allocation3], 1 }
 0x150   :  { %104 = vsyncpa [#allocation4], 1 }

</bundles_post_ra>
